<compile_context>
chip_gen: v5e
topology: v5e:2x2
jax: 0.10.0
libtpu: 0.0.40
codegen_flags: <defaults>
</compile_context>

<pallas_src>
import functools

import jax
import jax.numpy as jnp
from jax.experimental import pallas as pl
from jax.experimental.pallas import tpu as pltpu

EPS = 1e-5        # nn.InstanceNorm2d default eps
NEG_SLOPE = 0.2   # LeakyReLU negative slope


def _stage(p_ref, b_ref, chan_ref, H, W, Cout):
    """One conv3x3(pad=1, no bias) -> InstanceNorm2d -> LeakyReLU(0.2) stage.

    p_ref:    (H+2, (W+2)*Ci)        zero-padded input, row-flattened (c fastest)
    b_ref:    (3, (W+2)*Ci, W*Cout)  banded conv weights (dy on first axis)
    chan_ref: (W*Cout, W*Cout)       channel indicator (i%Cout == j%Cout), f32
    Returns an (H, W*Cout) float32 value in the same row-flattened layout.
    """
    # 3x3 conv: one matmul per dy; dx taps and the channel contraction are
    # folded into the banded K axis.  Value accumulation (no scratch RMW).
    acc = jnp.dot(p_ref[pl.ds(0, H), :], b_ref[0],
                  preferred_element_type=jnp.float32)
    acc = acc + jnp.dot(p_ref[pl.ds(1, H), :], b_ref[1],
                        preferred_element_type=jnp.float32)
    acc = acc + jnp.dot(p_ref[pl.ds(2, H), :], b_ref[2],
                        preferred_element_type=jnp.float32)

    # InstanceNorm2d (no affine, biased variance, two-pass/centered, all f32).
    # Per-channel spatial stats: sublane reduce over H, then one tiny matmul
    # with the channel-indicator matrix sums over W and rebroadcasts the stat
    # to every (w, c) lane position in one shot.
    inv_hw = jnp.float32(1.0 / (H * W))
    chan = chan_ref[...]
    mean = inv_hw * jnp.dot(jnp.sum(acc, axis=0, keepdims=True), chan,
                            preferred_element_type=jnp.float32)
    d = acc - mean
    var = inv_hw * jnp.dot(jnp.sum(d * d, axis=0, keepdims=True), chan,
                           preferred_element_type=jnp.float32)
    y = d * jax.lax.rsqrt(var + jnp.float32(EPS))

    # LeakyReLU(negative_slope=0.2) as a single max.
    return jnp.maximum(y, jnp.float32(NEG_SLOPE) * y)


def _conv_block_kernel(x_ref, b1_ref, b2_ref, chan_ref, out_ref, p1, p2,
                       *, H, W, Cin, Cout):
    """Fused two-stage ConvBlock for one batch sample (grid axis = N).

    x_ref:    (1, H, W*Cin)            input sample, row-flattened   (VMEM)
    b1_ref:   (3, (W+2)*Cin,  W*Cout)  stage-1 banded weights        (VMEM)
    b2_ref:   (3, (W+2)*Cout, W*Cout)  stage-2 banded weights        (VMEM)
    chan_ref: (W*Cout, W*Cout)         channel indicator matrix      (VMEM)
    out_ref:  (1, H, W*Cout)           output block (lane-dense)     (VMEM)
    p1:       (H+2, (W+2)*Cin)         stage-1 padded scratch        (VMEM)
    p2:       (H+2, (W+2)*Cout)        stage-2 padded scratch        (VMEM)
    """
    # Zero padding lives in VMEM; the flat scratches are a few KB so zeroing
    # them is a handful of vector stores and is megacore-safe.
    p1[...] = jnp.zeros_like(p1)
    p2[...] = jnp.zeros_like(p2)

    # ---- Stage 1: interior write, conv + InstanceNorm + LeakyReLU ----------
    p1[pl.ds(1, H), pl.ds(Cin, W * Cin)] = x_ref[0].astype(p1.dtype)
    y1 = _stage(p1, b1_ref, chan_ref, H, W, Cout)
    # Dropout2d(p=0.0) == identity.

    # ---- Stage 2: stage-1 activation goes straight into the padded scratch --
    p2[pl.ds(1, H), pl.ds(Cout, W * Cout)] = y1.astype(p2.dtype)
    y2 = _stage(p2, b2_ref, chan_ref, H, W, Cout)
    out_ref[0] = y2.astype(out_ref.dtype)


def _band_weights(w_oihw, W, dtype):
    """PyTorch OIHW conv weight -> per-dy banded matrices for the flat layout.

    Returns B of shape (3, (W+2)*Cin, W*Cout) with
      B[dy, j*Cin + c, w*Cout + o] = w[o, c, dy, j - w]  if 0 <= j - w < 3
                                     0                    otherwise
    where j indexes the zero-padded input column and w the output column.
    """
    wt = jnp.transpose(w_oihw, (2, 3, 1, 0))              # OIHW -> HWIO
    kh, kw, cin, cout = wt.shape
    j = jnp.arange(W + 2)
    wcol = jnp.arange(W)
    dx = j[:, None] - wcol[None, :]                       # (W+2, W)
    valid = (dx >= 0) & (dx < kw)
    dx_c = jnp.clip(dx, 0, kw - 1)
    b = wt[:, dx_c, :, :]                                 # (kh, W+2, W, Cin, Cout)
    b = b * valid[None, :, :, None, None].astype(wt.dtype)
    b = jnp.transpose(b, (0, 1, 3, 2, 4))                 # (kh, W+2, Cin, W, Cout)
    return b.reshape(kh, (W + 2) * cin, W * cout).astype(dtype)


def conv_block_forward(x_nchw, w1_oihw, w2_oihw, *, conv_dtype=jnp.float32):
    """ConvBlock.forward: two fused stages of conv3x3 -> InstanceNorm2d ->
    LeakyReLU(0.2) -> Dropout2d(0).

    x_nchw:  (N, Cin, H, W)     activations, PyTorch NCHW layout
    w1_oihw: (Cout, Cin, 3, 3)  PyTorch Conv2d weight layout
    w2_oihw: (Cout, Cout, 3, 3)
    conv_dtype: dtype of the MXU operands (banded weights + padded activation
        scratches).  jnp.bfloat16 halves weight/activation VMEM and uses the
        MXU's native input format on v5e/v6e; InstanceNorm math stays f32.
    returns  (N, Cout, H, W)
    """
    N, Cin, H, W = x_nchw.shape
    Cout = w1_oihw.shape[0]

    # NCHW -> row-flattened NHWC (N, H, W*Cin); plain-JAX glue at the edges.
    x = jnp.transpose(x_nchw, (0, 2, 3, 1)).reshape(N, H, W * Cin)

    b1 = _band_weights(w1_oihw, W, conv_dtype)            # (3, (W+2)*Cin,  W*Cout)
    b2 = _band_weights(w2_oihw, W, conv_dtype)            # (3, (W+2)*Cout, W*Cout)

    # Channel indicator: sums per-channel stats over W and rebroadcasts them.
    lane = jnp.arange(W * Cout)
    chan = (lane[:, None] % Cout == lane[None, :] % Cout).astype(jnp.float32)

    kernel = functools.partial(_conv_block_kernel, H=H, W=W, Cin=Cin, Cout=Cout)

    out_flat = pl.pallas_call(
        kernel,
        out_shape=jax.ShapeDtypeStruct((N, H, W * Cout), x_nchw.dtype),
        grid=(N,),
        in_specs=[
            pl.BlockSpec((1, H, W * Cin), lambda n: (n, 0, 0)),
            pl.BlockSpec((3, (W + 2) * Cin, W * Cout), lambda n: (0, 0, 0)),
            pl.BlockSpec((3, (W + 2) * Cout, W * Cout), lambda n: (0, 0, 0)),
            pl.BlockSpec((W * Cout, W * Cout), lambda n: (0, 0)),
        ],
        out_specs=pl.BlockSpec((1, H, W * Cout), lambda n: (n, 0, 0)),
        scratch_shapes=[
            pltpu.VMEM((H + 2, (W + 2) * Cin), conv_dtype),
            pltpu.VMEM((H + 2, (W + 2) * Cout), conv_dtype),
        ],
        compiler_params=pltpu.CompilerParams(
            dimension_semantics=("parallel",),
        ),
    )(x, b1, b2, chan)

    out = out_flat.reshape(N, H, W, Cout)                 # free: same memory order
    return jnp.transpose(out, (0, 3, 1, 2))               # NHWC -> NCHW


def _init_conv_weight(key, in_chans, out_chans):
    # Deterministic init mimicking PyTorch Conv2d default:
    # uniform(-1/sqrt(fan_in), 1/sqrt(fan_in)), fan_in = in_chans * 3 * 3.
    bound = 1.0 / jnp.sqrt(jnp.float32(in_chans * 9))
    # OIHW layout like PyTorch: (Cout, Cin, 3, 3)
    return jax.random.uniform(key, (out_chans, in_chans, 3, 3),
                              dtype=jnp.float32, minval=-bound, maxval=bound)


def _reference_forward(x_nchw, w1_oihw, w2_oihw):
    """Pure-JAX reference of the ConvBlock forward (for a numerics check)."""
    def stage(x_nhwc, w_oihw):
        w = jnp.transpose(w_oihw, (2, 3, 1, 0))           # HWIO
        _, H, W, _ = x_nhwc.shape
        xp = jnp.pad(x_nhwc, ((0, 0), (1, 1), (1, 1), (0, 0)))
        y = sum(
            jnp.einsum("nhwc,co->nhwo", xp[:, dy:dy + H, dx:dx + W, :],
                       w[dy, dx], precision=jax.lax.Precision.HIGHEST)
            for dy in range(3) for dx in range(3))
        mean = jnp.mean(y, axis=(1, 2), keepdims=True)
        var = jnp.mean((y - mean) ** 2, axis=(1, 2), keepdims=True)
        y = (y - mean) * jax.lax.rsqrt(var + EPS)
        return jnp.where(y >= 0, y, NEG_SLOPE * y)

    x = jnp.transpose(x_nchw, (0, 2, 3, 1))
    y = stage(x, w1_oihw)
    y = stage(y, w2_oihw)
    return jnp.transpose(y, (0, 3, 1, 2))


if __name__ == "__main__":
    key = jax.random.PRNGKey(0)
    k_x, k_w1, k_w2 = jax.random.split(key, 3)

    in_chans, out_chans = 4, 8
    N, H, W = 2, 16, 16

    x = jax.random.normal(k_x, (N, in_chans, H, W), dtype=jnp.float32)  # NCHW
    w1 = _init_conv_weight(k_w1, in_chans, out_chans)                    # OIHW
    w2 = _init_conv_weight(k_w2, out_chans, out_chans)

    out = jax.jit(conv_block_forward)(x, w1, w2)
    jax.block_until_ready(out)

    assert out.shape == (N, out_chans, H, W), out.shape
    assert out.dtype == jnp.float32

    ref = _reference_forward(x, w1, w2)
    max_err = float(jnp.max(jnp.abs(out - ref)))
    assert max_err < 2e-2, f"max abs error vs reference: {max_err}"

    print("KERNEL_OK")
</pallas_src>

<mosaic_0001>
module attributes {stable_mosaic.version = 11 : i64} {
  func.func @_conv_block_kernel(%arg0: i32, %arg1: memref<1x16x64xf32, #tpu.memory_space<vmem>>, %arg2: memref<3x72x128xf32, #tpu.memory_space<vmem>>, %arg3: memref<3x144x128xf32, #tpu.memory_space<vmem>>, %arg4: memref<128x128xf32, #tpu.memory_space<vmem>>, %arg5: memref<1x16x128xf32, #tpu.memory_space<vmem>>, %arg6: memref<18x72xf32, #tpu.memory_space<vmem>>, %arg7: memref<18x144xf32, #tpu.memory_space<vmem>>) attributes {dimension_semantics = [#tpu.dimension_semantics<parallel>], iteration_bounds = array<i64: 2>, scalar_prefetch = 0 : i64, scratch_operands = 2 : i64, tpu.core_type = #tpu.core_type<tc>, window_params = [{transform_indices = @transform_0, window_bounds = array<i64: 1, 16, 64>}, {pipeline_mode = #tpu.pipeline_mode<synchronous>, transform_indices = @transform_1, window_bounds = array<i64: 3, 72, 128>}, {pipeline_mode = #tpu.pipeline_mode<synchronous>, transform_indices = @transform_2, window_bounds = array<i64: 3, 144, 128>}, {pipeline_mode = #tpu.pipeline_mode<synchronous>, transform_indices = @transform_3, window_bounds = array<i64: 128, 128>}, {transform_indices = @transform_4, window_bounds = array<i64: 1, 16, 128>}]} {
    %cst = arith.constant 0.000000e+00 : f32
    %0 = vector.broadcast %cst : f32 to vector<18x72xf32>
    %c0 = arith.constant 0 : index
    %c0_0 = arith.constant 0 : index
    %1 = vector.load %arg6[%c0, %c0_0] : memref<18x72xf32, #tpu.memory_space<vmem>>, vector<18x72xf32>
    tpu.vector_store %arg6[%c0, %c0_0], %0 {strides = array<i32>} : memref<18x72xf32, #tpu.memory_space<vmem>>, vector<18x72xf32>,
    %cst_1 = arith.constant 0.000000e+00 : f32
    %2 = vector.broadcast %cst_1 : f32 to vector<18x144xf32>
    %c0_2 = arith.constant 0 : index
    %c0_3 = arith.constant 0 : index
    %3 = vector.load %arg7[%c0_2, %c0_3] : memref<18x144xf32, #tpu.memory_space<vmem>>, vector<18x144xf32>
    tpu.vector_store %arg7[%c0_2, %c0_3], %2 {strides = array<i32>} : memref<18x144xf32, #tpu.memory_space<vmem>>, vector<18x144xf32>,
    %c0_4 = arith.constant 0 : index
    %c0_5 = arith.constant 0 : index
    %c0_6 = arith.constant 0 : index
    %4 = vector.load %arg1[%c0_4, %c0_5, %c0_6] : memref<1x16x64xf32, #tpu.memory_space<vmem>>, vector<1x16x64xf32>
    %5 = vector.shape_cast %4 : vector<1x16x64xf32> to vector<16x64xf32>
    %c1 = arith.constant 1 : index
    %c4 = arith.constant 4 : index
    %6 = vector.load %arg6[%c1, %c4] : memref<18x72xf32, #tpu.memory_space<vmem>>, vector<16x64xf32>
    tpu.vector_store %arg6[%c1, %c4], %5 {strides = array<i32>} : memref<18x72xf32, #tpu.memory_space<vmem>>, vector<16x64xf32>,
    %c0_7 = arith.constant 0 : index
    %c0_8 = arith.constant 0 : index
    %7 = vector.load %arg6[%c0_7, %c0_8] : memref<18x72xf32, #tpu.memory_space<vmem>>, vector<16x72xf32>
    %c0_9 = arith.constant 0 : index
    %c0_10 = arith.constant 0 : index
    %c0_11 = arith.constant 0 : index
    %8 = vector.load %arg2[%c0_9, %c0_10, %c0_11] : memref<3x72x128xf32, #tpu.memory_space<vmem>>, vector<1x72x128xf32>
    %9 = vector.shape_cast %8 : vector<1x72x128xf32> to vector<72x128xf32>
    %cst_12 = arith.constant dense<0.000000e+00> : vector<16x128xf32>
    %10 = tpu.matmul %7, %9, %cst_12 {dimension_numbers = #tpu.dot_dimension_numbers<[1], [0], [0], [1], [0, 0, 1, 1], [], []>} : vector<16x72xf32>, vector<72x128xf32>, vector<16x128xf32> -> vector<16x128xf32>
    %c1_13 = arith.constant 1 : index
    %c0_14 = arith.constant 0 : index
    %11 = vector.load %arg6[%c1_13, %c0_14] : memref<18x72xf32, #tpu.memory_space<vmem>>, vector<16x72xf32>
    %c1_15 = arith.constant 1 : index
    %c0_16 = arith.constant 0 : index
    %c0_17 = arith.constant 0 : index
    %12 = vector.load %arg2[%c1_15, %c0_16, %c0_17] : memref<3x72x128xf32, #tpu.memory_space<vmem>>, vector<1x72x128xf32>
    %13 = vector.shape_cast %12 : vector<1x72x128xf32> to vector<72x128xf32>
    %cst_18 = arith.constant dense<0.000000e+00> : vector<16x128xf32>
    %14 = tpu.matmul %11, %13, %cst_18 {dimension_numbers = #tpu.dot_dimension_numbers<[1], [0], [0], [1], [0, 0, 1, 1], [], []>} : vector<16x72xf32>, vector<72x128xf32>, vector<16x128xf32> -> vector<16x128xf32>
    %15 = arith.addf %10, %14 : vector<16x128xf32>
    %c2 = arith.constant 2 : index
    %c0_19 = arith.constant 0 : index
    %16 = vector.load %arg6[%c2, %c0_19] : memref<18x72xf32, #tpu.memory_space<vmem>>, vector<16x72xf32>
    %c2_20 = arith.constant 2 : index
    %c0_21 = arith.constant 0 : index
    %c0_22 = arith.constant 0 : index
    %17 = vector.load %arg2[%c2_20, %c0_21, %c0_22] : memref<3x72x128xf32, #tpu.memory_space<vmem>>, vector<1x72x128xf32>
    %18 = vector.shape_cast %17 : vector<1x72x128xf32> to vector<72x128xf32>
    %cst_23 = arith.constant dense<0.000000e+00> : vector<16x128xf32>
    %19 = tpu.matmul %16, %18, %cst_23 {dimension_numbers = #tpu.dot_dimension_numbers<[1], [0], [0], [1], [0, 0, 1, 1], [], []>} : vector<16x72xf32>, vector<72x128xf32>, vector<16x128xf32> -> vector<16x128xf32>
    %20 = arith.addf %15, %19 : vector<16x128xf32>
    %c0_24 = arith.constant 0 : index
    %c0_25 = arith.constant 0 : index
    %21 = vector.load %arg4[%c0_24, %c0_25] : memref<128x128xf32, #tpu.memory_space<vmem>>, vector<128x128xf32>
    %cst_26 = arith.constant dense<0.000000e+00> : vector<128xf32>
    %22 = vector.multi_reduction <add>, %20, %cst_26 [0] : vector<16x128xf32> to vector<128xf32>
    %23 = vector.shape_cast %22 : vector<128xf32> to vector<1x128xf32>
    %cst_27 = arith.constant dense<0.000000e+00> : vector<1x128xf32>
    %24 = tpu.matmul %23, %21, %cst_27 {dimension_numbers = #tpu.dot_dimension_numbers<[1], [0], [0], [1], [0, 0, 1, 1], [], []>} : vector<1x128xf32>, vector<128x128xf32>, vector<1x128xf32> -> vector<1x128xf32>
    %cst_28 = arith.constant 3.906250e-03 : f32
    %25 = vector.broadcast %cst_28 : f32 to vector<1x128xf32>
    %26 = arith.mulf %25, %24 : vector<1x128xf32>
    %27 = vector.broadcast %26 : vector<1x128xf32> to vector<16x128xf32>
    %28 = arith.subf %20, %27 : vector<16x128xf32>
    %29 = arith.mulf %28, %28 : vector<16x128xf32>
    %cst_29 = arith.constant dense<0.000000e+00> : vector<128xf32>
    %30 = vector.multi_reduction <add>, %29, %cst_29 [0] : vector<16x128xf32> to vector<128xf32>
    %31 = vector.shape_cast %30 : vector<128xf32> to vector<1x128xf32>
    %cst_30 = arith.constant dense<0.000000e+00> : vector<1x128xf32>
    %32 = tpu.matmul %31, %21, %cst_30 {dimension_numbers = #tpu.dot_dimension_numbers<[1], [0], [0], [1], [0, 0, 1, 1], [], []>} : vector<1x128xf32>, vector<128x128xf32>, vector<1x128xf32> -> vector<1x128xf32>
    %cst_31 = arith.constant 3.906250e-03 : f32
    %33 = vector.broadcast %cst_31 : f32 to vector<1x128xf32>
    %34 = arith.mulf %33, %32 : vector<1x128xf32>
    %cst_32 = arith.constant 9.99999974E-6 : f32
    %35 = vector.broadcast %cst_32 : f32 to vector<1x128xf32>
    %36 = arith.addf %34, %35 : vector<1x128xf32>
    %37 = math.rsqrt %36 : vector<1x128xf32>
    %38 = vector.broadcast %37 : vector<1x128xf32> to vector<16x128xf32>
    %39 = arith.mulf %28, %38 : vector<16x128xf32>
    %cst_33 = arith.constant 2.000000e-01 : f32
    %40 = vector.broadcast %cst_33 : f32 to vector<16x128xf32>
    %41 = arith.mulf %40, %39 : vector<16x128xf32>
    %42 = arith.maximumf %39, %41 : vector<16x128xf32>
    %c1_34 = arith.constant 1 : index
    %c8 = arith.constant 8 : index
    %43 = vector.load %arg7[%c1_34, %c8] : memref<18x144xf32, #tpu.memory_space<vmem>>, vector<16x128xf32>
    tpu.vector_store %arg7[%c1_34, %c8], %42 {strides = array<i32>} : memref<18x144xf32, #tpu.memory_space<vmem>>, vector<16x128xf32>,
    %c0_35 = arith.constant 0 : index
    %c0_36 = arith.constant 0 : index
    %44 = vector.load %arg7[%c0_35, %c0_36] : memref<18x144xf32, #tpu.memory_space<vmem>>, vector<16x144xf32>
    %c0_37 = arith.constant 0 : index
    %c0_38 = arith.constant 0 : index
    %c0_39 = arith.constant 0 : index
    %45 = vector.load %arg3[%c0_37, %c0_38, %c0_39] : memref<3x144x128xf32, #tpu.memory_space<vmem>>, vector<1x144x128xf32>
    %46 = vector.shape_cast %45 : vector<1x144x128xf32> to vector<144x128xf32>
    %cst_40 = arith.constant dense<0.000000e+00> : vector<16x128xf32>
    %47 = tpu.matmul %44, %46, %cst_40 {dimension_numbers = #tpu.dot_dimension_numbers<[1], [0], [0], [1], [0, 0, 1, 1], [], []>} : vector<16x144xf32>, vector<144x128xf32>, vector<16x128xf32> -> vector<16x128xf32>
    %c1_41 = arith.constant 1 : index
    %c0_42 = arith.constant 0 : index
    %48 = vector.load %arg7[%c1_41, %c0_42] : memref<18x144xf32, #tpu.memory_space<vmem>>, vector<16x144xf32>
    %c1_43 = arith.constant 1 : index
    %c0_44 = arith.constant 0 : index
    %c0_45 = arith.constant 0 : index
    %49 = vector.load %arg3[%c1_43, %c0_44, %c0_45] : memref<3x144x128xf32, #tpu.memory_space<vmem>>, vector<1x144x128xf32>
    %50 = vector.shape_cast %49 : vector<1x144x128xf32> to vector<144x128xf32>
    %cst_46 = arith.constant dense<0.000000e+00> : vector<16x128xf32>
    %51 = tpu.matmul %48, %50, %cst_46 {dimension_numbers = #tpu.dot_dimension_numbers<[1], [0], [0], [1], [0, 0, 1, 1], [], []>} : vector<16x144xf32>, vector<144x128xf32>, vector<16x128xf32> -> vector<16x128xf32>
    %52 = arith.addf %47, %51 : vector<16x128xf32>
    %c2_47 = arith.constant 2 : index
    %c0_48 = arith.constant 0 : index
    %53 = vector.load %arg7[%c2_47, %c0_48] : memref<18x144xf32, #tpu.memory_space<vmem>>, vector<16x144xf32>
    %c2_49 = arith.constant 2 : index
    %c0_50 = arith.constant 0 : index
    %c0_51 = arith.constant 0 : index
    %54 = vector.load %arg3[%c2_49, %c0_50, %c0_51] : memref<3x144x128xf32, #tpu.memory_space<vmem>>, vector<1x144x128xf32>
    %55 = vector.shape_cast %54 : vector<1x144x128xf32> to vector<144x128xf32>
    %cst_52 = arith.constant dense<0.000000e+00> : vector<16x128xf32>
    %56 = tpu.matmul %53, %55, %cst_52 {dimension_numbers = #tpu.dot_dimension_numbers<[1], [0], [0], [1], [0, 0, 1, 1], [], []>} : vector<16x144xf32>, vector<144x128xf32>, vector<16x128xf32> -> vector<16x128xf32>
    %57 = arith.addf %52, %56 : vector<16x128xf32>
    %c0_53 = arith.constant 0 : index
    %c0_54 = arith.constant 0 : index
    %58 = vector.load %arg4[%c0_53, %c0_54] : memref<128x128xf32, #tpu.memory_space<vmem>>, vector<128x128xf32>
    %cst_55 = arith.constant dense<0.000000e+00> : vector<128xf32>
    %59 = vector.multi_reduction <add>, %57, %cst_55 [0] : vector<16x128xf32> to vector<128xf32>
    %60 = vector.shape_cast %59 : vector<128xf32> to vector<1x128xf32>
    %cst_56 = arith.constant dense<0.000000e+00> : vector<1x128xf32>
    %61 = tpu.matmul %60, %58, %cst_56 {dimension_numbers = #tpu.dot_dimension_numbers<[1], [0], [0], [1], [0, 0, 1, 1], [], []>} : vector<1x128xf32>, vector<128x128xf32>, vector<1x128xf32> -> vector<1x128xf32>
    %cst_57 = arith.constant 3.906250e-03 : f32
    %62 = vector.broadcast %cst_57 : f32 to vector<1x128xf32>
    %63 = arith.mulf %62, %61 : vector<1x128xf32>
    %64 = vector.broadcast %63 : vector<1x128xf32> to vector<16x128xf32>
    %65 = arith.subf %57, %64 : vector<16x128xf32>
    %66 = arith.mulf %65, %65 : vector<16x128xf32>
    %cst_58 = arith.constant dense<0.000000e+00> : vector<128xf32>
    %67 = vector.multi_reduction <add>, %66, %cst_58 [0] : vector<16x128xf32> to vector<128xf32>
    %68 = vector.shape_cast %67 : vector<128xf32> to vector<1x128xf32>
    %cst_59 = arith.constant dense<0.000000e+00> : vector<1x128xf32>
    %69 = tpu.matmul %68, %58, %cst_59 {dimension_numbers = #tpu.dot_dimension_numbers<[1], [0], [0], [1], [0, 0, 1, 1], [], []>} : vector<1x128xf32>, vector<128x128xf32>, vector<1x128xf32> -> vector<1x128xf32>
    %cst_60 = arith.constant 3.906250e-03 : f32
    %70 = vector.broadcast %cst_60 : f32 to vector<1x128xf32>
    %71 = arith.mulf %70, %69 : vector<1x128xf32>
    %cst_61 = arith.constant 9.99999974E-6 : f32
    %72 = vector.broadcast %cst_61 : f32 to vector<1x128xf32>
    %73 = arith.addf %71, %72 : vector<1x128xf32>
    %74 = math.rsqrt %73 : vector<1x128xf32>
    %75 = vector.broadcast %74 : vector<1x128xf32> to vector<16x128xf32>
    %76 = arith.mulf %65, %75 : vector<16x128xf32>
    %cst_62 = arith.constant 2.000000e-01 : f32
    %77 = vector.broadcast %cst_62 : f32 to vector<16x128xf32>
    %78 = arith.mulf %77, %76 : vector<16x128xf32>
    %79 = arith.maximumf %76, %78 : vector<16x128xf32>
    %c0_63 = arith.constant 0 : index
    %c0_64 = arith.constant 0 : index
    %c0_65 = arith.constant 0 : index
    %80 = vector.load %arg5[%c0_63, %c0_64, %c0_65] : memref<1x16x128xf32, #tpu.memory_space<vmem>>, vector<1x16x128xf32>
    %81 = vector.shape_cast %80 : vector<1x16x128xf32> to vector<16x128xf32>
    %82 = vector.shape_cast %79 : vector<16x128xf32> to vector<1x16x128xf32>
    tpu.vector_store %arg5[%c0_63, %c0_64, %c0_65], %82 {strides = array<i32>} : memref<1x16x128xf32, #tpu.memory_space<vmem>>, vector<1x16x128xf32>,
    return
  }
  func.func @transform_0(%arg0: i32) -> (i32, i32, i32) {
    %c0_i32 = arith.constant 0 : i32
    %c0_i32_0 = arith.constant 0 : i32
    %c0_i32_1 = arith.constant 0 : i32
    return %arg0, %c0_i32, %c0_i32_0 : i32, i32, i32
  }
  func.func @transform_1(%arg0: i32) -> (i32, i32, i32) {
    %c0_i32 = arith.constant 0 : i32
    %c0_i32_0 = arith.constant 0 : i32
    %c0_i32_1 = arith.constant 0 : i32
    %c0_i32_2 = arith.constant 0 : i32
    return %c0_i32, %c0_i32_0, %c0_i32_1 : i32, i32, i32
  }
  func.func @transform_2(%arg0: i32) -> (i32, i32, i32) {
    %c0_i32 = arith.constant 0 : i32
    %c0_i32_0 = arith.constant 0 : i32
    %c0_i32_1 = arith.constant 0 : i32
    %c0_i32_2 = arith.constant 0 : i32
    return %c0_i32, %c0_i32_0, %c0_i32_1 : i32, i32, i32
  }
  func.func @transform_3(%arg0: i32) -> (i32, i32) {
    %c0_i32 = arith.constant 0 : i32
    %c0_i32_0 = arith.constant 0 : i32
    %c0_i32_1 = arith.constant 0 : i32
    return %c0_i32, %c0_i32_0 : i32, i32
  }
  func.func @transform_4(%arg0: i32) -> (i32, i32, i32) {
    %c0_i32 = arith.constant 0 : i32
    %c0_i32_0 = arith.constant 0 : i32
    %c0_i32_1 = arith.constant 0 : i32
    return %arg0, %c0_i32, %c0_i32_0 : i32, i32, i32
  }
}

</mosaic_0001>

<bundles_post_ra>
// kernel: conv_block_forward.1
= control target key start
LH: loop header
LB: loop body
LE: loop exit
PB: predicated region body
PF: predicated region fallthrough
CT: control target
= control target key end

     0   :  { %s1009_s15 = smov 0   ;;  %s1453_s0 = inlined_call_operand.vmem [shape: f32[2,16,64], index: 0, kind: input, shape index: {}]   ;;  %s1454_s1 = inlined_call_operand.vmem [shape: f32[3,72,128], index: 1, kind: input, shape index: {}]   ;;  %s1455_s2 = inlined_call_operand.vmem [shape: f32[3,144,128], index: 2, kind: input, shape index: {}]   ;;  %s1456_s3 = inlined_call_operand.vmem [shape: f32[128,128], index: 3, kind: input, shape index: {}]   ;;  %s1457_s4 = inlined_call_operand.vmem [shape: f32[2,16,128], index: 4, kind: output, shape index: {}]  }
   0x1 LB: > { %s879_s16 = sadd.s32 4294967295, %s979_s15   ;;  %p883_p0 = scmp.ge.s32.totalorder %s979_s15, 1  ;;  %s979_s15 = sphi %s1009_s15, %s14_s15  }
   0x2   : > { %p162_p1 = scmp.lt.s32.totalorder %s979_s15, 3 }
   0x4   : > { %p163_p2 = pnand %p883_p0, %p162_p1 }
   0x5   : > { %p188_p3 = scmp.lt.s32.totalorder (!%p163_p2), %s879_s16, 1  ;;  %s982_s17 = smov (!%p163_p2), 4  }
   0x6   : > { %166 = sbr.rel (%p163_p2) target bundleno = 1243 (0x4db), region = 36  ;;  %s983_s13 = smov (!%p163_p2), 8  }
   0xb   : > { %v896_v0 = vld [vmem:[%s1454_s1 + $0x88] sm:$0xff]  ;;  %v234_v1 = vld [vmem:[%s1454_s1 + $0x40] sm:$0xff]  ;;  %vm198_vm0 = vcmask 588800   ;;  %v233_v3 = vld [vmem:[%s1454_s1 + $0x38] sm:$0xff]  ;;  %s1459_s16 = smov (!%p188_p3, %s879_s16), 1  ;;  %v981_v6 = vmov 0.0  }
   0xc   : > { %v895_v2 = vld [vmem:[%s1454_s1 + $0x80] sm:$0xff]  ;;  %260 = vmatpush.msra.mxu0 %v896_v0  ;;  %289 = vmatpush.msra.mxu1 %v234_v1  ;;  %v894_v4 = vld [vmem:[%s1454_s1 + $0x78] sm:$0xff]  ;;  %v232_v5 = vld [vmem:[%s1454_s1 + $0x30] sm:$0xff]  ;;  %199 = vst.msk [vmem:[#allocation2] sm:$0xff] %vm198_vm0, %v981_v6  ;;  %s956_s5 = sshll.u32 %s1459_s16, 4  ;;  %vm201_vm1 = vcmask 582656  }
   0xd   : > { %v909_v7 = vld [vmem:[%s1454_s1 + $0xd0] sm:$0xff]  ;;  %200 = vst.msk [vmem:[#allocation2 + $0x8] sm:$0xff] %vm198_vm0, %v981_v6  ;;  %s192_s10 = scalar_lea.vmem %s1453_s0, %s956_s5  ;;  %v231_v9 = vld [vmem:[%s1454_s1 + $0x28] sm:$0xff]  ;;  %v230_v12 = vld [vmem:[%s1454_s1 + $0x20] sm:$0xff]  ;;  %vm221_vm2 = vcmask 556064   ;;  %vm209_vm3 = vcmask 123904   ;;  %s197_s9 = scalar_lea.vmem %s1457_s4, %s956_s5 }
   0xe   : > { %261 = vmatpush.msra.mxu0 %v895_v2  ;;  %290 = vmatpush.msra.mxu1 %v233_v3  ;;  %v893_v8 = vld [vmem:[%s1454_s1 + $0x70] sm:$0xff]  ;;  %203 = vst [vmem:[#allocation3] sm:$0xff] %v981_v6  ;;  %v211_v10 = vld [vmem:[%s192_s10] sm:$0xff]  ;;  %v892_v11 = vld [vmem:[%s1454_s1 + $0x68] sm:$0xff]  ;;  %vm445_vm7 = vcmask 1040384   ;;  %vm204_vm8 = vcmask 130048  }
   0xf   : > { %330 = vmatpush.msra.mxu2 %v909_v7  ;;  %206 = vst [vmem:[#allocation3 + $0x10] sm:$0xff] %v981_v6  ;;  %215 = vrot.lane.b32.xlu0 %v211_v10, %s982_s17  ;;  %v212_v13 = vld [vmem:[%s192_s10 + $0x8] sm:$0xff]  ;;  %v891_v14 = vld [vmem:[%s1454_s1 + $0x60] sm:$0xff]  ;;  %v229_v15 = vld [vmem:[%s1454_s1 + $0x18] sm:$0xff]  ;;  %vm466_vm9 = vcmask 1040448   ;;  %vm468_vm10 = vcmask 57344  }
  0x10   : > { %262 = vmatpush.msra.mxu0 %v894_v4  ;;  %291 = vmatpush.msra.mxu1 %v232_v5  ;;  %208 = vst [vmem:[#allocation3 + $0x20] sm:$0x3] %v981_v6  ;;  %v908_v16 = vld [vmem:[%s1454_s1 + $0xc8] sm:$0xff]  ;;  %v890_v17 = vld [vmem:[%s1454_s1 + $0x58] sm:$0xff]  ;;  %v228_v18 = vld [vmem:[%s1454_s1 + $0x10] sm:$0xff]  ;;  %vm458_vm11 = vcmask 1047617  }
  0x11   : > { %v907_v19 = vld [vmem:[%s1454_s1 + $0xc0] sm:$0xff]  ;;  %202 = vst.msk [vmem:[#allocation2 + $0x10] sm:$0x3] %vm201_vm1, %v981_v6  ;;  %331 = vmatpush.msra.mxu2 %v908_v16  ;;  %v889_v20 = vld [vmem:[%s1454_s1 + $0x50] sm:$0xff]  ;;  %v227_v21 = vld [vmem:[%s1454_s1 + $0x8] sm:$0xff]  ;;  %vm460_vm12 = vcmask 64513  }
  0x12   : > { %263 = vmatpush.msra.mxu0 %v893_v8  ;;  %292 = vmatpush.msra.mxu1 %v231_v9  ;;  %v906_v22 = vld [vmem:[%s1454_s1 + $0xb8] sm:$0xff]  ;;  %v888_v23 = vld [vmem:[%s1454_s1 + $0x48] sm:$0xff]  ;;  %v226_v24 = vld [vmem:[%s1454_s1] sm:$0xff]  ;;  %210 = vst.msk [vmem:[#allocation3 + $0x28] sm:$0x3] %vm209_vm3, %v981_v6  ;;  %vm462_vm13 = vcmask 1047616  }
  0x13   : > { %332 = vmatpush.msra.mxu2 %v907_v19  ;;  %v905_v25 = vld [vmem:[%s1454_s1 + $0xb0] sm:$0xff]  ;;  %v904_v26 = vld [vmem:[%s1454_s1 + $0xa8] sm:$0xff]  ;;  %v903_v27 = vld [vmem:[%s1454_s1 + $0xa0] sm:$0xff]  ;;  %205 = vst.msk [vmem:[#allocation3 + $0x8] sm:$0xff] %vm204_vm8, %v981_v6  ;;  %vm464_vm14 = vcmask 64512   ;;  %vm521_vm15 = vcmask 1046528  }
  0x14   : > { %264 = vmatpush.msra.mxu0 %v892_v11  ;;  %293 = vmatpush.msra.mxu1 %v230_v12  ;;  %v902_v28 = vld [vmem:[%s1454_s1 + $0x98] sm:$0xff]  ;;  %v901_v29 = vld [vmem:[%s1454_s1 + $0x90] sm:$0xff]  ;;  %v1135_v40 = vld [vmem:[%s1456_s3 + $0x68] sm:$0xff]  ;;  %207 = vst.msk [vmem:[#allocation3 + $0x18] sm:$0xff] %vm204_vm8, %v981_v6 }
  0x15   : > { %333 = vmatpush.msra.mxu2 %v906_v22  ;;  %v1123_v38 = vld [vmem:[%s1456_s3 + $0x78] sm:$0xff]  ;;  %v1129_v39 = vld [vmem:[%s1456_s3 + $0x70] sm:$0xff]  ;;  %v1144_v41 = vld [vmem:[%s1456_s3 + $0x60] sm:$0xff] }
  0x16   : > { %265 = vmatpush.msra.mxu0 %v891_v14  ;;  %294 = vmatpush.msra.mxu1 %v229_v15  ;;  %v1151_v42 = vld [vmem:[%s1456_s3 + $0x58] sm:$0xff]  ;;  %v1156_v43 = vld [vmem:[%s1456_s3 + $0x50] sm:$0xff]  ;;  %v1163_v44 = vld [vmem:[%s1456_s3 + $0x48] sm:$0xff] }
  0x17   : > { %217 = vrot.lane.b32.xlu0 %v212_v13, %s982_s17  ;;  %334 = vmatpush.msra.mxu2 %v905_v25  ;;  %v1172_v45 = vld [vmem:[%s1456_s3 + $0x40] sm:$0xff]  ;;  %v1179_v46 = vld [vmem:[%s1456_s3 + $0x38] sm:$0xff]  ;;  %v1186_v47 = vld [vmem:[%s1456_s3 + $0x30] sm:$0xff] }
  0x18   : > { %266 = vmatpush.msra.mxu0 %v890_v17  ;;  %295 = vmatpush.msra.mxu1 %v228_v18  ;;  %v1193_v48 = vld [vmem:[%s1456_s3 + $0x28] sm:$0xff]  ;;  %v1200_v49 = vld [vmem:[%s1456_s3 + $0x20] sm:$0xff]  ;;  %v1205_v50 = vld [vmem:[%s1456_s3 + $0x18] sm:$0xff] }
  0x19   : > { %335 = vmatpush.msra.mxu2 %v904_v26  ;;  %371 = vmatpush.msra.mxu3 %v1123_v38  ;;  %v1212_v51 = vld [vmem:[%s1456_s3 + $0x10] sm:$0xff]  ;;  %v1219_v52 = vld [vmem:[%s1456_s3 + $0x8] sm:$0xff]  ;;  %v1226_v53 = vld [vmem:[%s1456_s3] sm:$0xff] }
  0x1a   : > { %267 = vmatpush.msra.mxu0 %v889_v20  ;;  %296 = vmatpush.msra.mxu1 %v227_v21  ;;  %v947_v6 = vld [vmem:[%s1455_s2 + $0x188] sm:$0xff] }
  0x1b   : > { %336 = vmatpush.msra.mxu2 %v903_v27  ;;  %372 = vmatpush.msra.mxu3 %v1129_v39 }
  0x1c   : > { %268 = vmatpush.msra.mxu0 %v888_v23  ;;  %297 = vmatpush.msra.mxu1 %v226_v24 }
  0x1d   : > { %337 = vmatpush.msra.mxu2 %v902_v28  ;;  %373 = vmatpush.msra.mxu3 %v1135_v40 }
  0x1e   : > { %404 = vmatpush.msrb.mxu0 %v1123_v38 }
  0x1f   : > { %338 = vmatpush.msra.mxu2 %v901_v29  ;;  %374 = vmatpush.msra.mxu3 %v1144_v41 }
  0x20   : > { %405 = vmatpush.msrb.mxu0 %v1129_v39 }
  0x21   : > { %375 = vmatpush.msra.mxu3 %v1151_v42 }
  0x22   : > { %406 = vmatpush.msrb.mxu0 %v1135_v40 }
  0x23   : > { %376 = vmatpush.msra.mxu3 %v1156_v43 }
  0x24   : > { %407 = vmatpush.msrb.mxu0 %v1144_v41 }
  0x25   : > { %377 = vmatpush.msra.mxu3 %v1163_v44 }
  0x26   : > { %408 = vmatpush.msrb.mxu0 %v1151_v42 }
  0x27   : > { %378 = vmatpush.msra.mxu3 %v1172_v45 }
  0x28   : > { %409 = vmatpush.msrb.mxu0 %v1156_v43 }
  0x29   : > { %379 = vmatpush.msra.mxu3 %v1179_v46 }
  0x2a   : > { %410 = vmatpush.msrb.mxu0 %v1163_v44 }
  0x2b   : > { %380 = vmatpush.msra.mxu3 %v1186_v47 }
  0x2c   : > { %411 = vmatpush.msrb.mxu0 %v1172_v45 }
  0x2d   : > { %381 = vmatpush.msra.mxu3 %v1193_v48 }
  0x2e   : > { %412 = vmatpush.msrb.mxu0 %v1179_v46 }
  0x2f   : > { %382 = vmatpush.msra.mxu3 %v1200_v49 }
  0x30   : > { %413 = vmatpush.msrb.mxu0 %v1186_v47 }
  0x31   : > { %383 = vmatpush.msra.mxu3 %v1205_v50 }
  0x32   : > { %414 = vmatpush.msrb.mxu0 %v1193_v48 }
  0x33   : > { %384 = vmatpush.msra.mxu3 %v1212_v51 }
  0x34   : > { %415 = vmatpush.msrb.mxu0 %v1200_v49 }
  0x35   : > { %385 = vmatpush.msra.mxu3 %v1219_v52 }
  0x36   : > { %416 = vmatpush.msrb.mxu0 %v1205_v50 }
  0x37   : > { %386 = vmatpush.msra.mxu3 %v1226_v53 }
  0x38   : > { %417 = vmatpush.msrb.mxu0 %v1212_v51 }
  0x3a   : > { %418 = vmatpush.msrb.mxu0 %v1219_v52 }
  0x3c   : > { %419 = vmatpush.msrb.mxu0 %v1226_v53 }
  0x81   : > { %v216_v30 = vpop.permute.xlu0 %215 }
  0x82   : > { %222 = vst.msk [vmem:[#allocation2 + $0x1] sm:$0xff] %vm221_vm2, %v216_v30 }
  0x89   : > { %v218_v31 = vpop.permute.xlu0 %217  ;;  %v235_v32 = vld [vmem:[#allocation2 + $0x1] sm:$0xff] }
  0x8a   : > { %v224_v33 = vld [vmem:[#allocation2] sm:$0xff]  ;;  %223 = vst.msk [vmem:[#allocation2 + $0x9] sm:$0xff] %vm221_vm2, %v218_v31  ;;  %897 = vmatmul.msk.f32.vlgmr.msra.gmra.mxu0 %vm198_vm0, %v235_v32 }
  0x8b   : > { %899 = vmatmul.msk.f32.vlgmr.msra.gmra.mxu1 %vm198_vm0, %v224_v33 }
  0x91   : > { %v236_v34 = vld [vmem:[#allocation2 + $0x9] sm:$0xff] }
  0x92   : > { %v225_v35 = vld [vmem:[#allocation2 + $0x8] sm:$0xff]  ;;  %898 = vmatmul.msk.f32.gmra.mxu0 %vm198_vm0, %v236_v34 }
  0x93   : > { %v305_v36 = vld [vmem:[#allocation2 + $0x2] sm:$0xff]  ;;  %900 = vmatmul.msk.f32.gmra.mxu1 %vm198_vm0, %v225_v35  ;;  %v306_v37 = vld [vmem:[#allocation2 + $0xa] sm:$0xff] }
  0x94   : > { %910 = vmatmul.msk.f32.vlgmr.msra.gmra.mxu2 %vm198_vm0, %v305_v36 }
  0x9c   : > { %911 = vmatmul.msk.f32.gmra.mxu2 %vm198_vm0, %v306_v37  ;;  %vm662_vm0 = vcmask 1045504  }
 0x107   : > { %v270_v54 = vpop.f32.mrf.mxu0 }
 0x108   : > { %v299_v55 = vpop.f32.mrf.mxu1 }
 0x109   : > { %v300_v59 = vadd.f32 %v299_v55, %v270_v54 }
 0x10f   : > { %v273_v57 = vpop.f32.mrf.mxu0 }
 0x110   : > { %v302_v58 = vpop.f32.mrf.mxu1 }
 0x111   : > { %v303_v60 = vadd.f32 %v302_v58, %v273_v57  ;;  %v489_v58 = vld [vmem:[%s1455_s2 + $0x78] sm:$0xff] }
 0x112   : > { %589 = vmatpush.msrb.mxu3 %v489_v58  ;;  %v935_v58 = vld [vmem:[%s1455_s2 + $0x128] sm:$0xff] }
 0x117   : > { %v340_v56 = vpop.f32.mrf.mxu2 }
 0x118   : > { %v346_v62 = vadd.f32 %v340_v56, %v300_v59  ;;  %v488_v59 = vld [vmem:[%s1455_s2 + $0x70] sm:$0xff] }
 0x119   : > { %590 = vmatpush.msrb.mxu3 %v488_v59  ;;  %v912_v59 = vld [vmem:[%s1455_s2 + $0x90] sm:$0xff] }
 0x11f   : > { %v343_v61 = vpop.f32.mrf.mxu2 }
 0x120   : > { %v347_v63 = vadd.f32 %v343_v61, %v303_v60  ;;  %v487_v60 = vld [vmem:[%s1455_s2 + $0x68] sm:$0xff] }
 0x121   : > { %v927_v61 = vld [vmem:[%s1455_s2 + $0x108] sm:$0xff]  ;;  %591 = vmatpush.msrb.mxu3 %v487_v60  ;;  %v934_v60 = vld [vmem:[%s1455_s2 + $0x120] sm:$0xff] }
 0x122   : > { %v364_v0 = vadd.f32 %v347_v63, %v346_v62  ;;  %538 = vmatpush.msrb.mxu1 %v927_v61  ;;  %v491_v61 = vld [vmem:[%s1455_s2 + $0x88] sm:$0xff] }
 0x124   : > { %v365_v1 = vrot.slane %v364_v0, 4 }
 0x126   : > { %v366_v2 = vadd.f32 %v365_v1, %v364_v0  ;;  %v948_v0 = vld [vmem:[%s1455_s2 + $0x190] sm:$0xff]  ;;  %v486_v1 = vld [vmem:[%s1455_s2 + $0x60] sm:$0xff] }
 0x127   : > { %592 = vmatpush.msrb.mxu3 %v486_v1 }
 0x128   : > { %v367_v3 = vrot.slane %v366_v2, 2 }
 0x12a   : > { %v368_v4 = vadd.f32 %v367_v3, %v366_v2  ;;  %v925_v2 = vld [vmem:[%s1455_s2 + $0xf8] sm:$0xff] }
 0x12b   : > { %v485_v3 = vld [vmem:[%s1455_s2 + $0x58] sm:$0xff] }
 0x12c   : > { %v369_v5 = vrot.slane %v368_v4, 1  ;;  %593 = vmatpush.msrb.mxu3 %v485_v3 }
 0x12e   : > { %v370_v7 = vadd.f32 %v369_v5, %v368_v4  ;;  %v924_v4 = vld [vmem:[%s1455_s2 + $0xf0] sm:$0xff]  ;;  %v946_v5 = vld [vmem:[%s1455_s2 + $0x180] sm:$0xff] }
 0x130   : > { %387 = vmatmul.f32.vlgmr.msra.gmra.mxu3 %v370_v7  ;;  %v484_v7 = vld [vmem:[%s1455_s2 + $0x50] sm:$0xff] }
 0x131   : > { %594 = vmatpush.msrb.mxu3 %v484_v7 }
 0x1b3   : > { %v388_v8 = vpop.f32.mrf.mxu3 }
 0x1b4   : > { %v391_v9 = vmul.f32 0.00390625, %v388_v8  ;;  %v923_v8 = vld [vmem:[%s1455_s2 + $0xe8] sm:$0xff] }
 0x1b6   : > { %v392_v10 = vperm.slane %v391_v9, 0  ;;  %v945_v9 = vld [vmem:[%s1455_s2 + $0x178] sm:$0xff] }
 0x1b8   : > { %v393_v11 = vsub.f32 %v346_v62, %v392_v10  ;;  %v394_v12 = vsub.f32 %v347_v63, %v392_v10  ;;  %v949_v62 = vld [vmem:[%s1455_s2 + $0x198] sm:$0xff]  ;;  %v926_v63 = vld [vmem:[%s1455_s2 + $0x100] sm:$0xff]  ;;  %v483_v10 = vld [vmem:[%s1455_s2 + $0x48] sm:$0xff] }
 0x1b9   : > { %679 = vmatpush.msra.mxu0 %v949_v62  ;;  %539 = vmatpush.msrb.mxu1 %v926_v63  ;;  %v951_v62 = vld [vmem:[%s1455_s2 + $0x1a8] sm:$0xff]  ;;  %v490_v63 = vld [vmem:[%s1455_s2 + $0x80] sm:$0xff] }
 0x1ba   : > { %v395_v13 = vmul.f32 %v393_v11, %v393_v11  ;;  %v396_v14 = vmul.f32 %v394_v12, %v394_v12  ;;  %595 = vmatpush.msrb.mxu3 %v483_v10 }
 0x1bb   : > { %680 = vmatpush.msra.mxu0 %v948_v0  ;;  %540 = vmatpush.msrb.mxu1 %v925_v2  ;;  %v950_v0 = vld [vmem:[%s1455_s2 + $0x1a0] sm:$0xff] }
 0x1bc   : > { %v397_v15 = vadd.f32 %v396_v14, %v395_v13  ;;  %v482_v13 = vld [vmem:[%s1455_s2 + $0x40] sm:$0xff]  ;;  %v481_v14 = vld [vmem:[%s1455_s2 + $0x38] sm:$0xff] }
 0x1bd   : > { %681 = vmatpush.msra.mxu0 %v947_v6  ;;  %541 = vmatpush.msrb.mxu1 %v924_v4 }
 0x1be   : > { %v398_v16 = vrot.slane %v397_v15, 4  ;;  %596 = vmatpush.msrb.mxu3 %v482_v13 }
 0x1bf   : > { %682 = vmatpush.msra.mxu0 %v946_v5  ;;  %542 = vmatpush.msrb.mxu1 %v923_v8 }
 0x1c0   : > { %v399_v17 = vadd.f32 %v398_v16, %v397_v15  ;;  %v480_v15 = vld [vmem:[%s1455_s2 + $0x30] sm:$0xff]  ;;  %597 = vmatpush.msrb.mxu3 %v481_v14  ;;  %v479_v16 = vld [vmem:[%s1455_s2 + $0x28] sm:$0xff] }
 0x1c1   : > { %683 = vmatpush.msra.mxu0 %v945_v9 }
 0x1c2   : > { %v400_v18 = vrot.slane %v399_v17, 2  ;;  %598 = vmatpush.msrb.mxu3 %v480_v15 }
 0x1c4   : > { %v401_v19 = vadd.f32 %v400_v18, %v399_v17  ;;  %v478_v17 = vld [vmem:[%s1455_s2 + $0x20] sm:$0xff]  ;;  %599 = vmatpush.msrb.mxu3 %v479_v16  ;;  %v921_v18 = vld [vmem:[%s1455_s2 + $0xd8] sm:$0xff] }
 0x1c6   : > { %v402_v20 = vrot.slane %v401_v19, 1  ;;  %600 = vmatpush.msrb.mxu3 %v478_v17 }
 0x1c8   : > { %v403_v21 = vadd.f32 %v402_v20, %v401_v19  ;;  %v943_v19 = vld [vmem:[%s1455_s2 + $0x168] sm:$0xff]  ;;  %v477_v20 = vld [vmem:[%s1455_s2 + $0x18] sm:$0xff] }
 0x1c9   : > { %601 = vmatpush.msrb.mxu3 %v477_v20 }
 0x1ca   : > { %420 = vmatmul.f32.vlgmr.msrb.gmra.mxu0 %v403_v21  ;;  %v920_v21 = vld [vmem:[%s1455_s2 + $0xd0] sm:$0xff] }
 0x247   : > { %v421_v22 = vpop.f32.mrf.mxu0 }
 0x248   : > { %v424_v23 = vmul.f32 0.00390625, %v421_v22  ;;  %v942_v22 = vld [vmem:[%s1455_s2 + $0x160] sm:$0xff] }
 0x24a   : > { %v425_v24 = vadd.f32 1e-05, %v424_v23  ;;  %v929_v23 = vld [vmem:[%s1455_s2 + $0x118] sm:$0xff] }
 0x24b   : > { %575 = vmatpush.msrb.mxu2 %v929_v23 }
 0x24c   : > { %969 = vrsqrt.f32 %v425_v24  ;;  %vm432_vm5 = vweird.f32 %v425_v24 }
 0x252   : > { %v970_v25 = vpop.eup %969 }
 0x253   : > { %v427_v26 = vmul.f32 %v970_v25, %v425_v24  ;;  %vm433_vm4 = vweird.f32 %v970_v25  ;;  %v476_v24 = vld [vmem:[%s1455_s2 + $0x10] sm:$0xff] }
 0x254   : > { %vm434_vm6 = vmor %vm432_vm5, %vm433_vm4  ;;  %602 = vmatpush.msrb.mxu3 %v476_v24 }
 0x255   : > { %v428_v27 = vmul.f32 %v970_v25, %v427_v26  ;;  %v941_v26 = vld [vmem:[%s1455_s2 + $0x158] sm:$0xff] }
 0x257   : > { %v429_v28 = vmul.f32 0.5, %v428_v27  ;;  %v475_v27 = vld [vmem:[%s1455_s2 + $0x8] sm:$0xff] }
 0x258   : > { %603 = vmatpush.msrb.mxu3 %v475_v27 }
 0x259   : > { %v430_v29 = vsub.f32 1.5, %v429_v28  ;;  %v918_v28 = vld [vmem:[%s1455_s2 + $0xc0] sm:$0xff] }
 0x25b   : > { %v431_v30 = vmul.f32 %v970_v25, %v430_v29  ;;  %v940_v29 = vld [vmem:[%s1455_s2 + $0x150] sm:$0xff] }
 0x25d   : > { %v435_v31 = vsel %vm434_vm6, %v970_v25, %v431_v30  ;;  %v919_v25 = vld [vmem:[%s1455_s2 + $0xc8] sm:$0xff]  ;;  %v474_v30 = vld [vmem:[%s1455_s2] sm:$0xff] }
 0x25e   : > { %v436_v32 = vperm.slane %v435_v31, 0  ;;  %604 = vmatpush.msrb.mxu3 %v474_v30 }
 0x260   : > { %v438_v33 = vmul.f32 %v436_v32, %v394_v12  ;;  %v437_v34 = vmul.f32 %v436_v32, %v393_v11  ;;  %v922_v11 = vld [vmem:[%s1455_s2 + $0xe0] sm:$0xff]  ;;  %v944_v12 = vld [vmem:[%s1455_s2 + $0x170] sm:$0xff]  ;;  %v917_v32 = vld [vmem:[%s1455_s2 + $0xb8] sm:$0xff]  ;;  %783 = vmatpush.msra.mxu3 %v1123_v38 }
 0x261   : > { %543 = vmatpush.msrb.mxu1 %v922_v11  ;;  %684 = vmatpush.msra.mxu0 %v944_v12 }
 0x262   : > { %v440_v35 = vmul.f32 0.2, %v438_v33  ;;  %v439_v36 = vmul.f32 0.2, %v437_v34  ;;  %784 = vmatpush.msra.mxu3 %v1129_v39 }
 0x263   : > { %544 = vmatpush.msrb.mxu1 %v921_v18  ;;  %685 = vmatpush.msra.mxu0 %v943_v19 }
 0x264   : > { %v442_v37 = vmax.f32 %v438_v33, %v440_v35  ;;  %v441_v54 = vmax.f32 %v437_v34, %v439_v36  ;;  %v939_v33 = vld [vmem:[%s1455_s2 + $0x148] sm:$0xff]  ;;  %v916_v34 = vld [vmem:[%s1455_s2 + $0xb0] sm:$0xff]  ;;  %v938_v35 = vld [vmem:[%s1455_s2 + $0x140] sm:$0xff]  ;;  %785 = vmatpush.msra.mxu3 %v1135_v40 }
 0x265   : > { %545 = vmatpush.msrb.mxu1 %v920_v21  ;;  %686 = vmatpush.msra.mxu0 %v942_v22  ;;  %v928_v36 = vld [vmem:[%s1455_s2 + $0x110] sm:$0xff] }
 0x266   : > { %v447_v55 = vrot.slane %v442_v37, 7  ;;  %v446_v56 = vrot.slane %v441_v54, 7  ;;  %576 = vmatpush.msrb.mxu2 %v928_v36  ;;  %v915_v37 = vld [vmem:[%s1455_s2 + $0xa8] sm:$0xff]  ;;  %v937_v54 = vld [vmem:[%s1455_s2 + $0x138] sm:$0xff]  ;;  %786 = vmatpush.msra.mxu3 %v1144_v41 }
 0x267   : > { %546 = vmatpush.msrb.mxu1 %v919_v25  ;;  %687 = vmatpush.msra.mxu0 %v941_v26 }
 0x268   : > { %453 = vrot.lane.b32.xlu2 %v447_v55, %s983_s13  ;;  %449 = vrot.lane.b32.xlu1 %v446_v56, %s983_s13  ;;  %v448_v57 = vsel %vm445_vm7, %v446_v56, %v447_v55  ;;  %v914_v55 = vld [vmem:[%s1455_s2 + $0xa0] sm:$0xff]  ;;  %v936_v56 = vld [vmem:[%s1455_s2 + $0x130] sm:$0xff] }
 0x269   : > { %547 = vmatpush.msrb.mxu1 %v918_v28  ;;  %688 = vmatpush.msra.mxu0 %v940_v29 }
 0x26a   : > { %787 = vmatpush.msra.mxu3 %v1151_v42  ;;  %626 = vmatpush.msra.mxu2 %v491_v61 }
 0x26b   : > { %548 = vmatpush.msrb.mxu1 %v917_v32  ;;  %689 = vmatpush.msra.mxu0 %v939_v33 }
 0x26c   : > { %788 = vmatpush.msra.mxu3 %v1156_v43  ;;  %627 = vmatpush.msra.mxu2 %v490_v63 }
 0x26d   : > { %549 = vmatpush.msrb.mxu1 %v916_v34  ;;  %690 = vmatpush.msra.mxu0 %v938_v35 }
 0x26e   : > { %789 = vmatpush.msra.mxu3 %v1163_v44 }
 0x26f   : > { %550 = vmatpush.msrb.mxu1 %v915_v37  ;;  %691 = vmatpush.msra.mxu0 %v937_v54 }
 0x270   : > { %451 = vrot.lane.b32.xlu1 %v448_v57, %s983_s13  ;;  %v913_v57 = vld [vmem:[%s1455_s2 + $0x98] sm:$0xff]  ;;  %790 = vmatpush.msra.mxu3 %v1172_v45 }
 0x271   : > { %551 = vmatpush.msrb.mxu1 %v914_v55  ;;  %692 = vmatpush.msra.mxu0 %v936_v56 }
 0x272   : > { %791 = vmatpush.msra.mxu3 %v1179_v46 }
 0x273   : > { %552 = vmatpush.msrb.mxu1 %v913_v57  ;;  %693 = vmatpush.msra.mxu0 %v935_v58 }
 0x274   : > { %792 = vmatpush.msra.mxu3 %v1186_v47 }
 0x275   : > { %553 = vmatpush.msrb.mxu1 %v912_v59  ;;  %694 = vmatpush.msra.mxu0 %v934_v60 }
 0x276   : > { %793 = vmatpush.msra.mxu3 %v1193_v48 }
 0x277   : > { %716 = vmatpush.msra.mxu1 %v951_v62 }
 0x278   : > { %794 = vmatpush.msra.mxu3 %v1200_v49 }
 0x279   : > { %717 = vmatpush.msra.mxu1 %v950_v0 }
 0x27a   : > { %795 = vmatpush.msra.mxu3 %v1205_v50 }
 0x27c   : > { %796 = vmatpush.msra.mxu3 %v1212_v51 }
 0x27e   : > { %797 = vmatpush.msra.mxu3 %v1219_v52 }
 0x280   : > { %798 = vmatpush.msra.mxu3 %v1226_v53 }
 0x2c2   : > { %v454_v31 = vpop.permute.xlu2 %453 }
 0x2c3   : > { %467 = vst.msk [vmem:[#allocation3 + $0x20] sm:$0x1] %vm466_vm9, %v454_v31 }
 0x2c4   : > { %469 = vst.msk [vmem:[#allocation3 + $0x28] sm:$0x1] %vm468_vm10, %v454_v31 }
 0x2ca   : > { %v494_v18 = vld [vmem:[#allocation3 + $0x20] sm:$0x1] }
 0x2cb   : > { %v637_v19 = vld [vmem:[#allocation3 + $0x20] sm:$0x3]  ;;  %v495_v20 = vld [vmem:[#allocation3 + $0x28] sm:$0x1]  ;;  %v528_v21 = vrot.slane %v494_v18, 1 }
 0x2cc   : > { %v669_v22 = vrot.slane %v637_v19, 2  ;;  %v530_v23 = vrot.slane %v495_v20, 1  ;;  %v638_v29 = vld [vmem:[#allocation3 + $0x28] sm:$0x3] }
 0x2da   : > { %v450_v1 = vpop.permute.xlu1 %449 }
 0x2db   : > { %459 = vst.msk [vmem:[#allocation3] sm:$0xfe] %vm458_vm11, %v450_v1 }
 0x2dc   : > { %461 = vst.msk [vmem:[#allocation3 + $0x8] sm:$0xfe] %vm460_vm12, %v450_v1 }
 0x2e2   : > { %v452_v2 = vpop.permute.xlu1 %451  ;;  %v470_v6 = vld [vmem:[#allocation3] sm:$0xff] }
 0x2e3   : > { %463 = vst.msk [vmem:[#allocation3 + $0x10] sm:$0xff] %vm462_vm13, %v452_v2  ;;  %605 = vmatmul.f32.vlgmr.msrb.gmra.mxu3 %v470_v6  ;;  %v492_v3 = vld [vmem:[#allocation3] sm:$0xfe]  ;;  %v493_v5 = vld [vmem:[#allocation3 + $0x8] sm:$0xfe] }
 0x2e4   : > { %465 = vst.msk [vmem:[#allocation3 + $0x18] sm:$0xff] %vm464_vm14, %v452_v2  ;;  %v635_v4 = vld [vmem:[#allocation3] sm:$0xfc]  ;;  %v522_v10 = vrot.slane %v492_v3, 1  ;;  %v525_v13 = vrot.slane %v493_v5, 1  ;;  %v471_v28 = vld [vmem:[#allocation3 + $0x8] sm:$0xff] }
 0x2e5   : > { %v663_v12 = vrot.slane %v635_v4, 2  ;;  %v636_v27 = vld [vmem:[#allocation3 + $0x8] sm:$0xfc] }
 0x2ea   : > { %v472_v7 = vld [vmem:[#allocation3 + $0x10] sm:$0xff] }
 0x2eb   : > { %v523_v8 = vrot.slane %v472_v7, 1  ;;  %608 = vmatmul.f32.gmra.mxu3 %v472_v7  ;;  %v664_v9 = vrot.slane %v472_v7, 2  ;;  %v473_v11 = vld [vmem:[#allocation3 + $0x18] sm:$0xff] }
 0x2ec   : > { %v526_v14 = vrot.slane %v473_v11, 1 }
 0x2ed   : > { %v524_v15 = vsel %vm521_vm15, %v522_v10, %v523_v8  ;;  %v665_v16 = vsel %vm662_vm0, %v663_v12, %v664_v9  ;;  %v529_v24 = vsel %vm521_vm15, %v523_v8, %v528_v21  ;;  %v670_v25 = vsel %vm662_vm0, %v664_v9, %v669_v22 }
 0x2ee   : > { %554 = vmatmul.f32.vlgmr.msrb.gmra.mxu1 %v524_v15  ;;  %v527_v17 = vsel %vm521_vm15, %v525_v13, %v526_v14  ;;  %695 = vmatmul.f32.vlgmr.msra.gmra.mxu0 %v665_v16  ;;  %v531_v26 = vsel %vm521_vm15, %v526_v14, %v530_v23 }
 0x2ef   : > { %930 = vmatmul.msk.f32.vlgmr.msrb.gmra.mxu2 %vm204_vm8, %v527_v17 }
 0x2f0   : > { %750 = vmatpush.msrb.mxu2 %v1123_v38  ;;  %v667_v38 = vrot.slane %v473_v11, 2 }
 0x2f2   : > { %751 = vmatpush.msrb.mxu2 %v1129_v39  ;;  %v666_v39 = vrot.slane %v636_v27, 2 }
 0x2f4   : > { %752 = vmatpush.msrb.mxu2 %v1135_v40  ;;  %v668_v40 = vsel %vm662_vm0, %v666_v39, %v667_v38 }
 0x2f6   : > { %557 = vmatmul.f32.gmra.mxu1 %v529_v24  ;;  %698 = vmatmul.f32.gmra.mxu0 %v670_v25 }
 0x2f7   : > { %931 = vmatmul.msk.f32.gmra.mxu2 %vm204_vm8, %v531_v26 }
 0x2f8   : > { %753 = vmatpush.msrb.mxu2 %v1144_v41  ;;  %v671_v41 = vrot.slane %v638_v29, 2 }
 0x2fa   : > { %754 = vmatpush.msrb.mxu2 %v1151_v42  ;;  %v672_v42 = vsel %vm662_vm0, %v667_v38, %v671_v41 }
 0x2fc   : > { %755 = vmatpush.msrb.mxu2 %v1156_v43 }
 0x2fe   : > { %952 = vmatmul.msk.f32.vlgmr.msra.gmra.mxu1 %vm204_vm8, %v668_v40  ;;  %756 = vmatpush.msrb.mxu2 %v1163_v44 }
 0x2ff   : > { %932 = vmatmul.msk.f32.vlgmr.msra.gmra.mxu2 %vm204_vm8, %v471_v28 }
 0x300   : > { %757 = vmatpush.msrb.mxu2 %v1172_v45 }
 0x302   : > { %758 = vmatpush.msrb.mxu2 %v1179_v46 }
 0x304   : > { %759 = vmatpush.msrb.mxu2 %v1186_v47 }
 0x306   : > { %953 = vmatmul.msk.f32.gmra.mxu1 %vm204_vm8, %v672_v42  ;;  %760 = vmatpush.msrb.mxu2 %v1193_v48 }
 0x307   : > { %933 = vmatmul.msk.f32.gmra.mxu2 %vm204_vm8, %v473_v11 }
 0x308   : > { %761 = vmatpush.msrb.mxu2 %v1200_v49 }
 0x30a   : > { %762 = vmatpush.msrb.mxu2 %v1205_v50 }
 0x30c   : > { %763 = vmatpush.msrb.mxu2 %v1212_v51 }
 0x30e   : > { %764 = vmatpush.msrb.mxu2 %v1219_v52 }
 0x310   : > { %765 = vmatpush.msrb.mxu2 %v1226_v53 }
 0x366   : > { %v606_v47 = vpop.f32.mrf.mxu3 }
 0x36b   : > { %v555_v43 = vpop.f32.mrf.mxu1  ;;  %v696_v31 = vpop.f32.mrf.mxu0 }
 0x36e   : > { %v609_v49 = vpop.f32.mrf.mxu3 }
 0x372   : > { %v578_v44 = vpop.f32.mrf.mxu2 }
 0x373   : > { %v558_v45 = vpop.f32.mrf.mxu1  ;;  %v579_v32 = vadd.f32 %v578_v44, %v555_v43  ;;  %v699_v51 = vpop.f32.mrf.mxu0 }
 0x375   : > { %v607_v34 = vadd.f32 %v606_v47, %v579_v32 }
 0x37a   : > { %v581_v46 = vpop.f32.mrf.mxu2 }
 0x37b   : > { %v719_v30 = vpop.f32.mrf.mxu1  ;;  %v582_v33 = vadd.f32 %v581_v46, %v558_v45 }
 0x37c   : > { %v720_v52 = vadd.f32 %v719_v30, %v696_v31 }
 0x37d   : > { %v610_v36 = vadd.f32 %v609_v49, %v582_v33 }
 0x382   : > { %v629_v48 = vpop.f32.mrf.mxu2 }
 0x383   : > { %v722_v35 = vpop.f32.mrf.mxu1  ;;  %v630_v50 = vadd.f32 %v629_v48, %v607_v34 }
 0x384   : > { %v723_v54 = vadd.f32 %v722_v35, %v699_v51 }
 0x385   : > { %v725_v55 = vadd.f32 %v720_v52, %v630_v50 }
 0x38a   : > { %v632_v37 = vpop.f32.mrf.mxu2 }
 0x38b   : > { %v633_v53 = vadd.f32 %v632_v37, %v610_v36 }
 0x38d   : > { %v726_v56 = vadd.f32 %v723_v54, %v633_v53 }
 0x38f   : > { %v743_v57 = vadd.f32 %v726_v56, %v725_v55 }
 0x391   : > { %v744_v58 = vrot.slane %v743_v57, 4 }
 0x393   : > { %v745_v59 = vadd.f32 %v744_v58, %v743_v57 }
 0x395   : > { %v746_v60 = vrot.slane %v745_v59, 2 }
 0x397   : > { %v747_v61 = vadd.f32 %v746_v60, %v745_v59 }
 0x399   : > { %v748_v62 = vrot.slane %v747_v61, 1 }
 0x39b   : > { %v749_v63 = vadd.f32 %v748_v62, %v747_v61 }
 0x39d   : > { %766 = vmatmul.f32.vlgmr.msrb.gmra.mxu2 %v749_v63 }
 0x420   : > { %v767_v0 = vpop.f32.mrf.mxu2 }
 0x421   : > { %v770_v1 = vmul.f32 0.00390625, %v767_v0 }
 0x423   : > { %v771_v2 = vperm.slane %v770_v1, 0 }
 0x425   : > { %v772_v6 = vsub.f32 %v725_v55, %v771_v2  ;;  %v773_v3 = vsub.f32 %v726_v56, %v771_v2 }
 0x427   : > { %v774_v4 = vmul.f32 %v772_v6, %v772_v6  ;;  %v775_v5 = vmul.f32 %v773_v3, %v773_v3 }
 0x429   : > { %v776_v7 = vadd.f32 %v775_v5, %v774_v4 }
 0x42b   : > { %v777_v8 = vrot.slane %v776_v7, 4 }
 0x42d   : > { %v778_v9 = vadd.f32 %v777_v8, %v776_v7 }
 0x42f   : > { %v779_v10 = vrot.slane %v778_v9, 2 }
 0x431   : > { %v780_v11 = vadd.f32 %v779_v10, %v778_v9 }
 0x433   : > { %v781_v12 = vrot.slane %v780_v11, 1 }
 0x435   : > { %v782_v13 = vadd.f32 %v781_v12, %v780_v11 }
 0x437   : > { %799 = vmatmul.f32.vlgmr.msra.gmra.mxu3 %v782_v13 }
 0x4ba   : > { %v800_v14 = vpop.f32.mrf.mxu3 }
 0x4bb   : > { %v803_v15 = vmul.f32 0.00390625, %v800_v14 }
 0x4bd   : > { %v804_v16 = vadd.f32 1e-05, %v803_v15 }
 0x4bf   : > { %971 = vrsqrt.f32 %v804_v16  ;;  %vm811_vm2 = vweird.f32 %v804_v16 }
 0x4c5   : > { %v972_v17 = vpop.eup %971 }
 0x4c6   : > { %v806_v18 = vmul.f32 %v972_v17, %v804_v16  ;;  %vm812_vm1 = vweird.f32 %v972_v17 }
 0x4c7   : > { %vm813_vm3 = vmor %vm811_vm2, %vm812_vm1 }
 0x4c8   : > { %v807_v19 = vmul.f32 %v972_v17, %v806_v18 }
 0x4ca   : > { %v808_v20 = vmul.f32 0.5, %v807_v19 }
 0x4cc   : > { %v809_v21 = vsub.f32 1.5, %v808_v20 }
 0x4ce   : > { %v810_v22 = vmul.f32 %v972_v17, %v809_v21 }
 0x4d0   : > { %v814_v23 = vsel %vm813_vm3, %v972_v17, %v810_v22 }
 0x4d1   : > { %v815_v24 = vperm.slane %v814_v23, 0 }
 0x4d3   : > { %v816_v25 = vmul.f32 %v815_v24, %v772_v6  ;;  %v817_v26 = vmul.f32 %v815_v24, %v773_v3 }
 0x4d5   : > { %v818_v27 = vmul.f32 0.2, %v816_v25  ;;  %v819_v38 = vmul.f32 0.2, %v817_v26 }
 0x4d7   : > { %v820_v39 = vmax.f32 %v816_v25, %v818_v27  ;;  %v821_v40 = vmax.f32 %v817_v26, %v819_v38 }
 0x4d9   : > { %822 = vst [vmem:[%s197_s9] sm:$0xff] %v820_v39 }
 0x4da   : > { %823 = vst [vmem:[%s197_s9 + $0x8] sm:$0xff] %v821_v40 }
 0x4db PF: > { %s14_s15 = sadd.s32 1, %s979_s15  }
 0x4dc   : > { %p11_p4 = scmp.ge.s32.totalorder %s14_s15, 4  }
 0x4de   :  { %13 = sbr.rel (!%p11_p4) target bundleno = 1 (0x1), region = 70 }

</bundles_post_ra>
